<compile_context>
chip_gen: v7x
topology: tpu7x:2x2x1
jax: 0.10.0
libtpu: 0.0.40
codegen_flags: <defaults>
</compile_context>

<pallas_src>
import jax
import jax.numpy as jnp
from jax.experimental import pallas as pl
from jax.experimental.pallas import tpu as pltpu

_TILE_BYTES = 8 * 1024 * 1024          # per-tile budget (input tile == output tile)
_VMEM_LIMIT_BYTES = 48 * 1024 * 1024   # 2*(in)+2*(out)=32 MiB resident + headroom; < v7x 64 MiB
_TINY_ELEMS = 8 * 128                  # below this, skip pallas_call entirely


def actnorm_affine_kernel(x_ref, p_ref, h_ref):
    # Elementwise affine in the input's native dtype: h = s * x + b.
    #   x_ref: (TM, TW)   p_ref: (TM, 2) with [:, 0] = scale, [:, 1] = scale*loc
    x = x_ref[...]
    p = p_ref[...].astype(x.dtype)      # cast fused params once per tile
    s = p[:, 0:1]                       # (TM, 1) broadcast across lanes
    b = p[:, 1:2]
    h_ref[...] = (x * s + b).astype(h_ref.dtype)


def _round_down(v, unit):
    return (v // unit) * unit


def _round_up(v, unit):
    return ((v + unit - 1) // unit) * unit


def _pick_tiles(R, HW, itemsize):
    """Choose (TM, TW) tiles for the (R, HW) slab under an 8 MiB tile budget."""
    budget = _TILE_BYTES // itemsize    # elements per tile

    if HW * 8 <= budget:
        # Full-width rows: contiguous HBM bursts, no masked trailing column
        # block, column grid collapses to a single block.
        TW = HW
        if R < 8:
            TM = R                      # full extent (exempt from the 8-multiple rule)
        else:
            TM = min(_round_down(R, 8), max(8, _round_down(budget // HW, 8)))
            # v7x dual-TC: keep >= 2 row blocks when the tensor allows it.
            if TM >= R and R >= 16:
                TM = min(TM, _round_up(pl.cdiv(R, 2), 8))
    else:
        # Very wide rows: split the lane axis, 8 rows per tile ~= full budget.
        TM = R if R < 8 else 8
        TW = min(_round_down(HW, 128), _round_down(budget // 8, 128))
    return TM, TW


def actnorm_forward(x, loc, scale, logdet=False):
    """ActNorm forward (reverse=False, eval mode).

    x:     (N, C, H, W) or (N, C)
    loc:   (1, C, 1, 1)
    scale: (1, C, 1, 1)
    """
    squeeze = (x.ndim == 2)
    if squeeze:
        N, C = x.shape
        H = W = 1
    else:
        N, C, H, W = x.shape

    loc_c = loc.reshape(C)
    scale_c = scale.reshape(C)

    if squeeze or x.size < _TINY_ELEMS:
        # Tiny / 2-D path: a single-block pallas_call has no bandwidth
        # advantage; let XLA fuse the elementwise directly.
        if squeeze:
            h = scale_c.astype(x.dtype) * (x + loc_c.astype(x.dtype))
        else:
            lc = loc_c.reshape(1, C, 1, 1).astype(x.dtype)
            sc = scale_c.reshape(1, C, 1, 1).astype(x.dtype)
            h = sc * (x + lc)
    else:
        R = N * C
        HW = H * W
        xr = x.reshape(R, HW)

        # Fused per-row params (f32, cast once per tile in-kernel):
        #   column 0 = scale, column 1 = bias = scale * loc.
        s32 = scale_c.astype(jnp.float32)
        b32 = s32 * loc_c.astype(jnp.float32)
        params = jnp.stack([s32, b32], axis=-1)                  # (C, 2)
        params = jnp.broadcast_to(params[None], (N, C, 2)).reshape(R, 2)

        TM, TW = _pick_tiles(R, HW, x.dtype.itemsize)
        grid = (pl.cdiv(R, TM), pl.cdiv(HW, TW))

        cost = pl.CostEstimate(
            flops=2 * R * HW,
            transcendentals=0,
            bytes_accessed=2 * R * HW * x.dtype.itemsize + params.size * 4,
        )

        h_flat = pl.pallas_call(
            actnorm_affine_kernel,
            out_shape=jax.ShapeDtypeStruct((R, HW), x.dtype),
            grid_spec=pltpu.PrefetchScalarGridSpec(
                num_scalar_prefetch=0,
                grid=grid,
                in_specs=[
                    pl.BlockSpec((TM, TW), lambda i, j: (i, j)),
                    pl.BlockSpec((TM, 2), lambda i, j: (i, 0)),
                ],
                out_specs=pl.BlockSpec((TM, TW), lambda i, j: (i, j)),
            ),
            compiler_params=pltpu.CompilerParams(
                dimension_semantics=("parallel", "parallel"),
                vmem_limit_bytes=_VMEM_LIMIT_BYTES),
            cost_estimate=cost,
        )(xr, params)
        h = h_flat.reshape(N, C, H, W)

    if logdet:
        # Parameter-only reduction, once in the wrapper, in float32.
        ld = jnp.float32(H * W) * jnp.sum(
            jnp.log(jnp.abs(scale_c.astype(jnp.float32))))
        ld = ld * jnp.ones((N,), dtype=jnp.float32)
        return h, ld
    return h


def actnorm_reference(x, loc, scale, logdet=False):
    """Pure-JAX reference matching the PyTorch forward (native-dtype affine)."""
    squeeze = (x.ndim == 2)
    x4 = x[:, :, None, None] if squeeze else x
    N, C, H, W = x4.shape
    lc = loc.reshape(1, C, 1, 1).astype(x.dtype)
    sc = scale.reshape(1, C, 1, 1).astype(x.dtype)
    h = sc * (x4 + lc)
    if squeeze:
        h = h[:, :, 0, 0]
    if logdet:
        ld = jnp.float32(H * W) * jnp.sum(
            jnp.log(jnp.abs(scale.reshape(-1).astype(jnp.float32))))
        return h, ld * jnp.ones((N,), dtype=jnp.float32)
    return h


if __name__ == "__main__":
    key = jax.random.PRNGKey(0)
    kx, kl, ks = jax.random.split(key, 3)

    # --- Case 1: small deterministic NCHW example (batch=2, C=4, 16x16) ---
    N, C, H, W = 2, 4, 16, 16
    x = jax.random.normal(kx, (N, C, H, W), dtype=jnp.float32)
    loc = 0.1 * jax.random.normal(kl, (1, C, 1, 1), dtype=jnp.float32)
    scale = 1.0 + 0.25 * jax.random.normal(ks, (1, C, 1, 1), dtype=jnp.float32)

    h, ld = actnorm_forward(x, loc, scale, logdet=True)
    h = jax.block_until_ready(h)
    ld = jax.block_until_ready(ld)
    h_ref, ld_ref = actnorm_reference(x, loc, scale, logdet=True)
    assert jnp.allclose(h, h_ref, atol=1e-5, rtol=1e-5), "h mismatch"
    assert jnp.allclose(ld, ld_ref, atol=1e-4, rtol=1e-5), "logdet mismatch"

    h2 = jax.block_until_ready(actnorm_forward(x, loc, scale, logdet=False))
    assert jnp.allclose(h2, h_ref, atol=1e-5, rtol=1e-5)

    # --- Case 2: multi-row-block grid (R=64 -> TM=32 -> 2 row blocks, full-
    #     width columns; exercises the v7x grid>=2 logic) ---
    C2 = 32
    x2 = jax.random.normal(kx, (N, C2, 24, 24), dtype=jnp.float32)
    loc2 = 0.1 * jax.random.normal(kl, (1, C2, 1, 1), dtype=jnp.float32)
    scale2 = 1.0 + 0.25 * jax.random.normal(ks, (1, C2, 1, 1), dtype=jnp.float32)
    h2t = jax.block_until_ready(actnorm_forward(x2, loc2, scale2, logdet=False))
    h2t_ref = actnorm_reference(x2, loc2, scale2, logdet=False)
    assert jnp.allclose(h2t, h2t_ref, atol=1e-5, rtol=1e-5), "tiled-row h mismatch"

    # --- Case 3: channels not a multiple of 8 (R = N*C < 8 full-extent path) ---
    C3 = 3
    x3 = jax.random.normal(kx, (N, C3, H, W), dtype=jnp.float32)
    loc3 = 0.1 * jax.random.normal(kl, (1, C3, 1, 1), dtype=jnp.float32)
    scale3 = 1.0 + 0.25 * jax.random.normal(ks, (1, C3, 1, 1), dtype=jnp.float32)
    h3 = jax.block_until_ready(actnorm_forward(x3, loc3, scale3, logdet=False))
    h3_ref = actnorm_reference(x3, loc3, scale3, logdet=False)
    assert jnp.allclose(h3, h3_ref, atol=1e-5, rtol=1e-5), "C=3 h mismatch"

    # --- Case 4: 2-D (squeeze) input path (pure-JAX bypass) ---
    x2d = jax.random.normal(kx, (N, C), dtype=jnp.float32)
    h2d, ld2d = actnorm_forward(x2d, loc, scale, logdet=True)
    h2d = jax.block_until_ready(h2d)
    h2d_ref, ld2d_ref = actnorm_reference(x2d, loc, scale, logdet=True)
    assert jnp.allclose(h2d, h2d_ref, atol=1e-5, rtol=1e-5), "2D h mismatch"
    assert jnp.allclose(ld2d, ld2d_ref, atol=1e-4, rtol=1e-5), "2D logdet mismatch"

    # --- Case 5: bf16 input (native-dtype compute path on v6e/v7x) ---
    xbf = jax.random.normal(kx, (N, C, H, W), dtype=jnp.bfloat16)
    hbf = jax.block_until_ready(actnorm_forward(xbf, loc, scale, logdet=False))
    hbf_ref = actnorm_reference(xbf, loc, scale, logdet=False)
    assert jnp.allclose(hbf.astype(jnp.float32), hbf_ref.astype(jnp.float32),
                        atol=2e-2, rtol=2e-2), "bf16 h mismatch"

    # --- Case 6: very wide rows -> column-split branch (HW > budget/8, R<8) ---
    C6 = 2
    x6 = jax.random.normal(kx, (1, C6, 512, 640), dtype=jnp.float32)
    loc6 = 0.1 * jax.random.normal(kl, (1, C6, 1, 1), dtype=jnp.float32)
    scale6 = 1.0 + 0.25 * jax.random.normal(ks, (1, C6, 1, 1), dtype=jnp.float32)
    h6 = jax.block_until_ready(actnorm_forward(x6, loc6, scale6, logdet=False))
    h6_ref = actnorm_reference(x6, loc6, scale6, logdet=False)
    assert jnp.allclose(h6, h6_ref, atol=1e-5, rtol=1e-5), "wide-row h mismatch"

    # TODO(synk): training-time data-dependent initialize() (mean/std over
    # (N,H,W) with a stateful `initialized` buffer) and the reverse() path are
    # stateful/branching module behaviors left outside this forward kernel.
    # TODO(synk): bf16 inputs compute the affine in bf16 (PyTorch would promote
    # to f32 via the f32 parameters); kept native-dtype for bandwidth.

    print("KERNEL_OK")
</pallas_src>

<mosaic_0001>
module attributes {stable_mosaic.version = 11 : i64} {
  func.func @actnorm_affine_kernel(%arg0: i32, %arg1: i32, %arg2: memref<8x256xf32, #tpu.memory_space<vmem>>, %arg3: memref<8x2xf32, #tpu.memory_space<vmem>>, %arg4: memref<8x256xf32, #tpu.memory_space<vmem>>) attributes {dimension_semantics = [#tpu.dimension_semantics<parallel>, #tpu.dimension_semantics<parallel>], iteration_bounds = array<i64: 1, 1>, scalar_prefetch = 0 : i64, scratch_operands = 0 : i64, tpu.core_type = #tpu.core_type<tc>, window_params = [{transform_indices = @transform_0, window_bounds = array<i64: 8, 256>}, {transform_indices = @transform_1, window_bounds = array<i64: 8, 2>}, {transform_indices = @transform_2, window_bounds = array<i64: 8, 256>}]} {
    %c0 = arith.constant 0 : index
    %c0_0 = arith.constant 0 : index
    %0 = vector.load %arg2[%c0, %c0_0] : memref<8x256xf32, #tpu.memory_space<vmem>>, vector<8x256xf32>
    %c0_1 = arith.constant 0 : index
    %c0_2 = arith.constant 0 : index
    %1 = vector.load %arg3[%c0_1, %c0_2] : memref<8x2xf32, #tpu.memory_space<vmem>>, vector<8x2xf32>
    %2 = vector.extract_strided_slice %1 {offsets = [0, 0], sizes = [8, 1], strides = [1, 1]} : vector<8x2xf32> to vector<8x1xf32>
    %3 = vector.extract_strided_slice %1 {offsets = [0, 1], sizes = [8, 1], strides = [1, 1]} : vector<8x2xf32> to vector<8x1xf32>
    %4 = vector.broadcast %2 : vector<8x1xf32> to vector<8x256xf32>
    %5 = arith.mulf %0, %4 : vector<8x256xf32>
    %6 = vector.broadcast %3 : vector<8x1xf32> to vector<8x256xf32>
    %7 = arith.addf %5, %6 : vector<8x256xf32>
    %c0_3 = arith.constant 0 : index
    %c0_4 = arith.constant 0 : index
    %8 = vector.load %arg4[%c0_3, %c0_4] : memref<8x256xf32, #tpu.memory_space<vmem>>, vector<8x256xf32>
    tpu.vector_store %arg4[%c0_3, %c0_4], %7 {strides = array<i32>} : memref<8x256xf32, #tpu.memory_space<vmem>>, vector<8x256xf32>,
    return
  }
  func.func @transform_0(%arg0: i32, %arg1: i32) -> (i32, i32) {
    %c0_i32 = arith.constant 0 : i32
    return %arg0, %arg1 : i32, i32
  }
  func.func @transform_1(%arg0: i32, %arg1: i32) -> (i32, i32) {
    %c0_i32 = arith.constant 0 : i32
    %c0_i32_0 = arith.constant 0 : i32
    return %arg0, %c0_i32 : i32, i32
  }
  func.func @transform_2(%arg0: i32, %arg1: i32) -> (i32, i32) {
    %c0_i32 = arith.constant 0 : i32
    return %arg0, %arg1 : i32, i32
  }
}

</mosaic_0001>

<bundles_post_ra>
// kernel: tpu_custom_call.1
= control target key start
LH: loop header
LB: loop body
LE: loop exit
PB: predicated region body
PF: predicated region fallthrough
CT: control target
= control target key end

     0   :  { %7 = vsyncpa [#allocation3], 0  ;;  %s157_s0 = inlined_call_operand.hbm [shape: f32[8,256], index: 0, kind: input, shape index: {}]   ;;  %s158_s1 = inlined_call_operand.vmem [shape: f32[8,2], index: 1, kind: input, shape index: {}]   ;;  %s159_s2 = inlined_call_operand.hbm [shape: f32[8,256], index: 2, kind: output, shape index: {}]  }
   0x1   :  { %8 = vsyncpa [#allocation4], 0  ;;  %s111_s9 = smov [#allocation2]   ;;  %s63_s13 = scalar_lea.hbm %s157_s0, 256 }
   0x2   :  { %s15_s10 = sshll.u32 %s111_s9, 4  ;;  %p64_p0 = scmp.ne.s32.totalorder %s157_s0, %s63_s13  ;;  %s16_s10 = int_to_ptr.vmem [resolvable:$true] %s15_s10 }
   0x3   :  { %p67_p1 = scmp.lt.u32.totalorder %s63_s13, %s157_s0 }
   0x5   :  { %p69_p2 = pnand %p67_p1, %p64_p0 }
   0x7   :  { %72 = shalt.err (!%p69_p2)
}
   0x8   :  { %s73_s18 = scalar_lea.vmem %s16_s10, 256  ;;  %p78_p4 = scmp.lt.s32.totalorder %s16_s10, %s16_s10 }
   0x9   :  { %p74_p3 = scmp.ne.s32.totalorder %s16_s10, %s73_s18  ;;  %p79_p5 = scmp.lt.s32.totalorder %s73_s18, %s73_s18 }
   0xb   :  { %p80_p6 = por %p79_p5, %p78_p4 }
   0xd   :  { %p81_p7 = pnand %p80_p6, %p74_p3 }
   0xf   :  { %84 = shalt.err (!%p81_p7)
}
  0x10   :  { %18 = dma.hbm_to_vmem [thread:$0]  %s157_s0, 256, %s16_s10, [#allocation3]  }
  0x11   :  { %107 = dma.done.wait [#allocation3], 256  }
  0x12   :  { %108 = vsyncadd [#allocation3], 4294967040  ;;  %v112_v0 = vmov 0   ;;  %v26_v1 = vld [vmem:[%s158_s1] sm:$0xff]  ;;  %v113_v2 = vmov 1   ;;  %v25_v5 = vld [vmem:[#allocation2 + $0x8] sm:$0xff] }
  0x13   :  { %61 = vset.pattern.permute.xlu0 %v112_v0  ;;  %v24_v4 = vld [vmem:[#allocation2] sm:$0xff]  ;;  %s114_s23 = smov [#allocation5]  }
  0x14   :  { %29 = vperm.xlu0 %61, %v26_v1   ;;  %s48_s24 = sshll.u32 %s114_s23, 4  ;;  %s49_s24 = int_to_ptr.vmem [resolvable:$true] %s48_s24 }
  0x15   :  { %s85_s0 = scalar_lea.vmem %s49_s24, 256  ;;  %p90_p9 = scmp.lt.s32.totalorder %s49_s24, %s49_s24 }
  0x16   :  { %p86_p8 = scmp.ne.s32.totalorder %s49_s24, %s85_s0  ;;  %p91_p10 = scmp.lt.s32.totalorder %s85_s0, %s85_s0 }
  0x18   :  { %62 = vset.pattern.permute.xlu0 %v113_v2  ;;  %p92_p11 = por %p91_p10, %p90_p9 }
  0x19   :  { %35 = vperm.xlu0 %62, %v26_v1  }
  0x1a   :  { %p93_p12 = pnand %p92_p11, %p86_p8 }
  0x93   :  { %v30_v3 = vpop.permute.xlu0 %29 }
  0x94   :  { %v32_v6 = vmul.f32 %v30_v3, %v24_v4  ;;  %v33_v7 = vmul.f32 %v30_v3, %v25_v5 }
  0x98   :  { %v36_v8 = vpop.permute.xlu0 %35 }
  0x99   :  { %v38_v9 = vadd.f32 %v36_v8, %v32_v6  ;;  %v39_v10 = vadd.f32 %v36_v8, %v33_v7 }
  0x9b   :  { %40 = vst [vmem:[#allocation5] sm:$0xff] %v38_v9  ;;  %41 = vst [vmem:[#allocation5 + $0x8] sm:$0xff] %v39_v10 }
  0x9c   :  { %96 = shalt.err (!%p93_p12)
}
  0x9d   :  { %s97_s26 = scalar_lea.hbm %s159_s2, 256 }
  0x9e   :  { %p98_p13 = scmp.ne.s32.totalorder %s159_s2, %s97_s26  ;;  %p101_p0 = scmp.lt.u32.totalorder %s97_s26, %s159_s2 }
  0xa0   :  { %p103_p1 = pnand %p101_p0, %p98_p13 }
  0xa2   :  { %106 = shalt.err (!%p103_p1)
}
  0xa3   :  { %51 = dma.vmem_to_hbm [thread:$0]  %s49_s24, 256, %s159_s2, [#allocation4]  }
  0xa4   :  { %109 = dma.done.wait [#allocation4], 256  }
  0xa5   :  { %110 = vsyncadd [#allocation4], 4294967040 }
  0xa6   :  { %55 = vsyncpa [#allocation3], 1 }
  0xa7   :  { %56 = vsyncpa [#allocation4], 1 }

</bundles_post_ra>
